<compile_context>
chip_gen: v5e
topology: v5e:2x2
jax: 0.10.0
libtpu: 0.0.40
codegen_flags: <defaults>
</compile_context>

<pallas_src>
import functools

import jax
import jax.numpy as jnp
from jax.experimental import pallas as pl
from jax.experimental.pallas import tpu as pltpu


# ----------------------------- Pallas kernel -------------------------------

def _fused_conv_kernel(x_ref, w_ref, b_ref, a_ref, o_ref, *, kh, kw, wp,
                       use_tanh):
    # x_ref: (1, C, Hp*Wp + KW-1)  zero-padded, flattened image (input dtype)
    # w_ref: (KH*KW, OC, C)        bf16 conv weight, tap-major
    # b_ref: (OC, 1)               f32 bias
    # a_ref: (OC, 1)               f32 negative slope (PReLU / LeakyReLU)
    # o_ref: (1, OC, OH*Wp)        output tile (input dtype), M lane-major
    oc = o_ref.shape[1]
    m = o_ref.shape[2]

    acc = jnp.zeros((oc, m), jnp.float32)
    for i in range(kh):                          # static, fully unrolled taps
        for j in range(kw):
            win = x_ref[0, :, pl.ds(i * wp + j, m)].astype(jnp.bfloat16)
            acc = acc + jnp.dot(w_ref[i * kw + j], win,
                                preferred_element_type=jnp.float32)

    acc = acc + b_ref[...]                       # bias (broadcast over lanes)
    if use_tanh:
        out = jnp.tanh(acc)                      # fused epilogue (EUP slot)
    else:
        out = jnp.where(acc > 0.0, acc, a_ref[...] * acc)   # PReLU / leaky
    o_ref[0] = out.astype(o_ref.dtype)


# ------------------------------ JAX wrapper ---------------------------------

def conv_layer_forward(x, weight, bias, prelu_alpha, *, stride, relu="prelu"):
    """Forward of ConvLayer.  x: [N, C, H, W] (NCHW, PyTorch layout)."""
    oc, ic, kh, kw = weight.shape
    pad_h, pad_w = kh // 2, kw // 2      # Conv2d(padding=int(kernel/2)), zeros
    n, c, h, w = x.shape
    assert c == ic

    # Zero-pad spatially, flatten H/W, add a KW-1 tail so every in-kernel tap
    # slice stays in bounds.  This is the only activation pre-pass (the
    # inherent (H+2p)(W+2p)/(HW) padding factor), no 9x im2col.
    xpad = jnp.pad(x, ((0, 0), (0, 0), (pad_h, pad_h), (pad_w, pad_w)))
    hp, wp = h + 2 * pad_h, w + 2 * pad_w
    oh1, ow1 = hp - kh + 1, wp - kw + 1          # stride-1 output extent
    xflat = jnp.pad(xpad.reshape(n, c, hp * wp),
                    ((0, 0), (0, 0), (0, kw - 1)))
    flat_len = hp * wp + (kw - 1)
    m_flat = oh1 * wp

    # Weight as [KH*KW, OC, IC] (tap-major), bf16 MXU operands.
    w3 = jnp.transpose(weight, (2, 3, 0, 1)).reshape(kh * kw, oc, ic)
    w3 = w3.astype(jnp.bfloat16)
    b2 = bias.astype(jnp.float32).reshape(oc, 1)

    if "prelu" in relu:
        # nn.PReLU(out_channels): per-output-channel slope, shape (OC,).
        a2 = prelu_alpha.astype(jnp.float32).reshape(oc, 1)
        use_tanh = False
    elif "leakyRelu" in relu:
        a2 = jnp.full((oc, 1), 0.01, jnp.float32)    # nn.LeakyReLU default
        use_tanh = False
    else:
        a2 = jnp.ones((oc, 1), jnp.float32)          # unused in tanh branch
        use_tanh = True

    kernel = functools.partial(_fused_conv_kernel, kh=kh, kw=kw, wp=wp,
                               use_tanh=use_tanh)

    out = pl.pallas_call(
        kernel,
        out_shape=jax.ShapeDtypeStruct((n, oc, m_flat), x.dtype),
        grid_spec=pltpu.PrefetchScalarGridSpec(
            num_scalar_prefetch=0,
            grid=(n,),
            in_specs=[
                pl.BlockSpec((1, c, flat_len), lambda b: (b, 0, 0)),
                pl.BlockSpec((kh * kw, oc, ic), lambda b: (0, 0, 0)),
                pl.BlockSpec((oc, 1), lambda b: (0, 0)),
                pl.BlockSpec((oc, 1), lambda b: (0, 0)),
            ],
            out_specs=pl.BlockSpec((1, oc, m_flat), lambda b: (b, 0, 0)),
        ),
        compiler_params=pltpu.CompilerParams(
            dimension_semantics=("parallel",),       # images across TCs (v7x)
            vmem_limit_bytes=48 * 1024 * 1024,       # safe on v5e/v6e/v7x
        ),
    )(xflat, w3, b2, a2)

    # Crop the (Wp - OW) garbage columns; result is already NCHW.
    out = out.reshape(n, oc, oh1, wp)[:, :, :, :ow1]
    if stride > 1:
        # TODO(synk): fold the stride into the kernel's tap slicing; for now a
        # stride-1 conv + subsample (correct, extra MXU work only).
        out = out[:, :, ::stride, ::stride]
    return out


# ------------------------------- main ---------------------------------------

if __name__ == "__main__":
    # ConvLayer(in_channels=4, out_channels=8, kernel_size=3, stride=1, relu='prelu')
    N, IC, H, W = 2, 4, 16, 16
    OC, KH, KW, STRIDE = 8, 3, 3, 1

    key = jax.random.PRNGKey(0)
    kx, kwt, kb = jax.random.split(key, 3)

    x = jax.random.normal(kx, (N, IC, H, W), dtype=jnp.float32)
    fan_in = IC * KH * KW
    bound = 1.0 / (fan_in ** 0.5)
    weight = jax.random.uniform(kwt, (OC, IC, KH, KW), jnp.float32, -bound, bound)
    bias = jax.random.uniform(kb, (OC,), jnp.float32, -bound, bound)
    prelu_alpha = jnp.full((OC,), 0.25, dtype=jnp.float32)   # nn.PReLU init

    out = conv_layer_forward(x, weight, bias, prelu_alpha,
                             stride=STRIDE, relu="prelu")
    out = jax.block_until_ready(out)

    # Reference: same bf16-operand / f32-accumulate convolution, bias + PReLU.
    ref = jax.lax.conv_general_dilated(
        x.astype(jnp.bfloat16), weight.astype(jnp.bfloat16),
        window_strides=(STRIDE, STRIDE),
        padding=((KH // 2, KH // 2), (KW // 2, KW // 2)),
        dimension_numbers=("NCHW", "OIHW", "NCHW"),
        preferred_element_type=jnp.float32)
    ref = ref + bias.reshape(1, OC, 1, 1)
    ref = jnp.where(ref > 0, ref, prelu_alpha.reshape(1, OC, 1, 1) * ref)

    assert out.shape == (N, OC, H, W)
    assert jnp.allclose(out, ref.astype(out.dtype), atol=1e-2, rtol=1e-2), \
        float(jnp.max(jnp.abs(out - ref)))

    print("KERNEL_OK")
</pallas_src>

<mosaic_0001>
module attributes {stable_mosaic.version = 11 : i64} {
  func.func @_fused_conv_kernel(%arg0: i32, %arg1: memref<1x4x326xf32, #tpu.memory_space<vmem>>, %arg2: memref<9x8x4xbf16, #tpu.memory_space<vmem>>, %arg3: memref<8x1xf32, #tpu.memory_space<vmem>>, %arg4: memref<8x1xf32, #tpu.memory_space<vmem>>, %arg5: memref<1x8x288xf32, #tpu.memory_space<vmem>>) attributes {dimension_semantics = [#tpu.dimension_semantics<parallel>], iteration_bounds = array<i64: 2>, scalar_prefetch = 0 : i64, scratch_operands = 0 : i64, tpu.core_type = #tpu.core_type<tc>, window_params = [{transform_indices = @transform_0, window_bounds = array<i64: 1, 4, 326>}, {pipeline_mode = #tpu.pipeline_mode<synchronous>, transform_indices = @transform_1, window_bounds = array<i64: 9, 8, 4>}, {pipeline_mode = #tpu.pipeline_mode<synchronous>, transform_indices = @transform_2, window_bounds = array<i64: 8, 1>}, {pipeline_mode = #tpu.pipeline_mode<synchronous>, transform_indices = @transform_3, window_bounds = array<i64: 8, 1>}, {transform_indices = @transform_4, window_bounds = array<i64: 1, 8, 288>}]} {
    %cst = arith.constant 0.000000e+00 : f32
    %0 = vector.broadcast %cst : f32 to vector<8x288xf32>
    %c0 = arith.constant 0 : index
    %c0_0 = arith.constant 0 : index
    %c0_1 = arith.constant 0 : index
    %1 = vector.load %arg1[%c0, %c0_0, %c0_1] : memref<1x4x326xf32, #tpu.memory_space<vmem>>, vector<1x4x288xf32>
    %2 = vector.shape_cast %1 : vector<1x4x288xf32> to vector<4x288xf32>
    %3 = arith.truncf %2 : vector<4x288xf32> to vector<4x288xbf16>
    %c0_2 = arith.constant 0 : index
    %c0_3 = arith.constant 0 : index
    %c0_4 = arith.constant 0 : index
    %4 = vector.load %arg2[%c0_2, %c0_3, %c0_4] : memref<9x8x4xbf16, #tpu.memory_space<vmem>>, vector<1x8x4xbf16>
    %5 = vector.shape_cast %4 : vector<1x8x4xbf16> to vector<8x4xbf16>
    %cst_5 = arith.constant dense<0.000000e+00> : vector<8x288xf32>
    %6 = tpu.matmul %5, %3, %cst_5 {dimension_numbers = #tpu.dot_dimension_numbers<[1], [0], [0], [1], [0, 0, 1, 1], [], []>} : vector<8x4xbf16>, vector<4x288xbf16>, vector<8x288xf32> -> vector<8x288xf32>
    %7 = arith.addf %0, %6 : vector<8x288xf32>
    %c0_6 = arith.constant 0 : index
    %c0_7 = arith.constant 0 : index
    %c1 = arith.constant 1 : index
    %8 = vector.load %arg1[%c0_6, %c0_7, %c1] : memref<1x4x326xf32, #tpu.memory_space<vmem>>, vector<1x4x288xf32>
    %9 = vector.shape_cast %8 : vector<1x4x288xf32> to vector<4x288xf32>
    %10 = arith.truncf %9 : vector<4x288xf32> to vector<4x288xbf16>
    %c1_8 = arith.constant 1 : index
    %c0_9 = arith.constant 0 : index
    %c0_10 = arith.constant 0 : index
    %11 = vector.load %arg2[%c1_8, %c0_9, %c0_10] : memref<9x8x4xbf16, #tpu.memory_space<vmem>>, vector<1x8x4xbf16>
    %12 = vector.shape_cast %11 : vector<1x8x4xbf16> to vector<8x4xbf16>
    %cst_11 = arith.constant dense<0.000000e+00> : vector<8x288xf32>
    %13 = tpu.matmul %12, %10, %cst_11 {dimension_numbers = #tpu.dot_dimension_numbers<[1], [0], [0], [1], [0, 0, 1, 1], [], []>} : vector<8x4xbf16>, vector<4x288xbf16>, vector<8x288xf32> -> vector<8x288xf32>
    %14 = arith.addf %7, %13 : vector<8x288xf32>
    %c0_12 = arith.constant 0 : index
    %c0_13 = arith.constant 0 : index
    %c2 = arith.constant 2 : index
    %15 = vector.load %arg1[%c0_12, %c0_13, %c2] : memref<1x4x326xf32, #tpu.memory_space<vmem>>, vector<1x4x288xf32>
    %16 = vector.shape_cast %15 : vector<1x4x288xf32> to vector<4x288xf32>
    %17 = arith.truncf %16 : vector<4x288xf32> to vector<4x288xbf16>
    %c2_14 = arith.constant 2 : index
    %c0_15 = arith.constant 0 : index
    %c0_16 = arith.constant 0 : index
    %18 = vector.load %arg2[%c2_14, %c0_15, %c0_16] : memref<9x8x4xbf16, #tpu.memory_space<vmem>>, vector<1x8x4xbf16>
    %19 = vector.shape_cast %18 : vector<1x8x4xbf16> to vector<8x4xbf16>
    %cst_17 = arith.constant dense<0.000000e+00> : vector<8x288xf32>
    %20 = tpu.matmul %19, %17, %cst_17 {dimension_numbers = #tpu.dot_dimension_numbers<[1], [0], [0], [1], [0, 0, 1, 1], [], []>} : vector<8x4xbf16>, vector<4x288xbf16>, vector<8x288xf32> -> vector<8x288xf32>
    %21 = arith.addf %14, %20 : vector<8x288xf32>
    %c0_18 = arith.constant 0 : index
    %c0_19 = arith.constant 0 : index
    %c18 = arith.constant 18 : index
    %22 = vector.load %arg1[%c0_18, %c0_19, %c18] : memref<1x4x326xf32, #tpu.memory_space<vmem>>, vector<1x4x288xf32>
    %23 = vector.shape_cast %22 : vector<1x4x288xf32> to vector<4x288xf32>
    %24 = arith.truncf %23 : vector<4x288xf32> to vector<4x288xbf16>
    %c3 = arith.constant 3 : index
    %c0_20 = arith.constant 0 : index
    %c0_21 = arith.constant 0 : index
    %25 = vector.load %arg2[%c3, %c0_20, %c0_21] : memref<9x8x4xbf16, #tpu.memory_space<vmem>>, vector<1x8x4xbf16>
    %26 = vector.shape_cast %25 : vector<1x8x4xbf16> to vector<8x4xbf16>
    %cst_22 = arith.constant dense<0.000000e+00> : vector<8x288xf32>
    %27 = tpu.matmul %26, %24, %cst_22 {dimension_numbers = #tpu.dot_dimension_numbers<[1], [0], [0], [1], [0, 0, 1, 1], [], []>} : vector<8x4xbf16>, vector<4x288xbf16>, vector<8x288xf32> -> vector<8x288xf32>
    %28 = arith.addf %21, %27 : vector<8x288xf32>
    %c0_23 = arith.constant 0 : index
    %c0_24 = arith.constant 0 : index
    %c19 = arith.constant 19 : index
    %29 = vector.load %arg1[%c0_23, %c0_24, %c19] : memref<1x4x326xf32, #tpu.memory_space<vmem>>, vector<1x4x288xf32>
    %30 = vector.shape_cast %29 : vector<1x4x288xf32> to vector<4x288xf32>
    %31 = arith.truncf %30 : vector<4x288xf32> to vector<4x288xbf16>
    %c4 = arith.constant 4 : index
    %c0_25 = arith.constant 0 : index
    %c0_26 = arith.constant 0 : index
    %32 = vector.load %arg2[%c4, %c0_25, %c0_26] : memref<9x8x4xbf16, #tpu.memory_space<vmem>>, vector<1x8x4xbf16>
    %33 = vector.shape_cast %32 : vector<1x8x4xbf16> to vector<8x4xbf16>
    %cst_27 = arith.constant dense<0.000000e+00> : vector<8x288xf32>
    %34 = tpu.matmul %33, %31, %cst_27 {dimension_numbers = #tpu.dot_dimension_numbers<[1], [0], [0], [1], [0, 0, 1, 1], [], []>} : vector<8x4xbf16>, vector<4x288xbf16>, vector<8x288xf32> -> vector<8x288xf32>
    %35 = arith.addf %28, %34 : vector<8x288xf32>
    %c0_28 = arith.constant 0 : index
    %c0_29 = arith.constant 0 : index
    %c20 = arith.constant 20 : index
    %36 = vector.load %arg1[%c0_28, %c0_29, %c20] : memref<1x4x326xf32, #tpu.memory_space<vmem>>, vector<1x4x288xf32>
    %37 = vector.shape_cast %36 : vector<1x4x288xf32> to vector<4x288xf32>
    %38 = arith.truncf %37 : vector<4x288xf32> to vector<4x288xbf16>
    %c5 = arith.constant 5 : index
    %c0_30 = arith.constant 0 : index
    %c0_31 = arith.constant 0 : index
    %39 = vector.load %arg2[%c5, %c0_30, %c0_31] : memref<9x8x4xbf16, #tpu.memory_space<vmem>>, vector<1x8x4xbf16>
    %40 = vector.shape_cast %39 : vector<1x8x4xbf16> to vector<8x4xbf16>
    %cst_32 = arith.constant dense<0.000000e+00> : vector<8x288xf32>
    %41 = tpu.matmul %40, %38, %cst_32 {dimension_numbers = #tpu.dot_dimension_numbers<[1], [0], [0], [1], [0, 0, 1, 1], [], []>} : vector<8x4xbf16>, vector<4x288xbf16>, vector<8x288xf32> -> vector<8x288xf32>
    %42 = arith.addf %35, %41 : vector<8x288xf32>
    %c0_33 = arith.constant 0 : index
    %c0_34 = arith.constant 0 : index
    %c36 = arith.constant 36 : index
    %43 = vector.load %arg1[%c0_33, %c0_34, %c36] : memref<1x4x326xf32, #tpu.memory_space<vmem>>, vector<1x4x288xf32>
    %44 = vector.shape_cast %43 : vector<1x4x288xf32> to vector<4x288xf32>
    %45 = arith.truncf %44 : vector<4x288xf32> to vector<4x288xbf16>
    %c6 = arith.constant 6 : index
    %c0_35 = arith.constant 0 : index
    %c0_36 = arith.constant 0 : index
    %46 = vector.load %arg2[%c6, %c0_35, %c0_36] : memref<9x8x4xbf16, #tpu.memory_space<vmem>>, vector<1x8x4xbf16>
    %47 = vector.shape_cast %46 : vector<1x8x4xbf16> to vector<8x4xbf16>
    %cst_37 = arith.constant dense<0.000000e+00> : vector<8x288xf32>
    %48 = tpu.matmul %47, %45, %cst_37 {dimension_numbers = #tpu.dot_dimension_numbers<[1], [0], [0], [1], [0, 0, 1, 1], [], []>} : vector<8x4xbf16>, vector<4x288xbf16>, vector<8x288xf32> -> vector<8x288xf32>
    %49 = arith.addf %42, %48 : vector<8x288xf32>
    %c0_38 = arith.constant 0 : index
    %c0_39 = arith.constant 0 : index
    %c37 = arith.constant 37 : index
    %50 = vector.load %arg1[%c0_38, %c0_39, %c37] : memref<1x4x326xf32, #tpu.memory_space<vmem>>, vector<1x4x288xf32>
    %51 = vector.shape_cast %50 : vector<1x4x288xf32> to vector<4x288xf32>
    %52 = arith.truncf %51 : vector<4x288xf32> to vector<4x288xbf16>
    %c7 = arith.constant 7 : index
    %c0_40 = arith.constant 0 : index
    %c0_41 = arith.constant 0 : index
    %53 = vector.load %arg2[%c7, %c0_40, %c0_41] : memref<9x8x4xbf16, #tpu.memory_space<vmem>>, vector<1x8x4xbf16>
    %54 = vector.shape_cast %53 : vector<1x8x4xbf16> to vector<8x4xbf16>
    %cst_42 = arith.constant dense<0.000000e+00> : vector<8x288xf32>
    %55 = tpu.matmul %54, %52, %cst_42 {dimension_numbers = #tpu.dot_dimension_numbers<[1], [0], [0], [1], [0, 0, 1, 1], [], []>} : vector<8x4xbf16>, vector<4x288xbf16>, vector<8x288xf32> -> vector<8x288xf32>
    %56 = arith.addf %49, %55 : vector<8x288xf32>
    %c0_43 = arith.constant 0 : index
    %c0_44 = arith.constant 0 : index
    %c38 = arith.constant 38 : index
    %57 = vector.load %arg1[%c0_43, %c0_44, %c38] : memref<1x4x326xf32, #tpu.memory_space<vmem>>, vector<1x4x288xf32>
    %58 = vector.shape_cast %57 : vector<1x4x288xf32> to vector<4x288xf32>
    %59 = arith.truncf %58 : vector<4x288xf32> to vector<4x288xbf16>
    %c8 = arith.constant 8 : index
    %c0_45 = arith.constant 0 : index
    %c0_46 = arith.constant 0 : index
    %60 = vector.load %arg2[%c8, %c0_45, %c0_46] : memref<9x8x4xbf16, #tpu.memory_space<vmem>>, vector<1x8x4xbf16>
    %61 = vector.shape_cast %60 : vector<1x8x4xbf16> to vector<8x4xbf16>
    %cst_47 = arith.constant dense<0.000000e+00> : vector<8x288xf32>
    %62 = tpu.matmul %61, %59, %cst_47 {dimension_numbers = #tpu.dot_dimension_numbers<[1], [0], [0], [1], [0, 0, 1, 1], [], []>} : vector<8x4xbf16>, vector<4x288xbf16>, vector<8x288xf32> -> vector<8x288xf32>
    %63 = arith.addf %56, %62 : vector<8x288xf32>
    %c0_48 = arith.constant 0 : index
    %c0_49 = arith.constant 0 : index
    %64 = vector.load %arg3[%c0_48, %c0_49] : memref<8x1xf32, #tpu.memory_space<vmem>>, vector<8x1xf32>
    %65 = vector.broadcast %64 : vector<8x1xf32> to vector<8x288xf32>
    %66 = arith.addf %63, %65 : vector<8x288xf32>
    %cst_50 = arith.constant 0.000000e+00 : f32
    %67 = vector.broadcast %cst_50 : f32 to vector<8x288xf32>
    %68 = arith.cmpf ogt, %66, %67 : vector<8x288xf32>
    %c0_51 = arith.constant 0 : index
    %c0_52 = arith.constant 0 : index
    %69 = vector.load %arg4[%c0_51, %c0_52] : memref<8x1xf32, #tpu.memory_space<vmem>>, vector<8x1xf32>
    %70 = vector.broadcast %69 : vector<8x1xf32> to vector<8x288xf32>
    %71 = arith.mulf %70, %66 : vector<8x288xf32>
    %72 = arith.select %68, %66, %71 : vector<8x288xi1>, vector<8x288xf32>
    %c0_53 = arith.constant 0 : index
    %c0_54 = arith.constant 0 : index
    %c0_55 = arith.constant 0 : index
    %73 = vector.load %arg5[%c0_53, %c0_54, %c0_55] : memref<1x8x288xf32, #tpu.memory_space<vmem>>, vector<1x8x288xf32>
    %74 = vector.shape_cast %73 : vector<1x8x288xf32> to vector<8x288xf32>
    %75 = vector.shape_cast %72 : vector<8x288xf32> to vector<1x8x288xf32>
    tpu.vector_store %arg5[%c0_53, %c0_54, %c0_55], %75 {strides = array<i32>} : memref<1x8x288xf32, #tpu.memory_space<vmem>>, vector<1x8x288xf32>,
    return
  }
  func.func @transform_0(%arg0: i32) -> (i32, i32, i32) {
    %c0_i32 = arith.constant 0 : i32
    %c0_i32_0 = arith.constant 0 : i32
    %c0_i32_1 = arith.constant 0 : i32
    return %arg0, %c0_i32, %c0_i32_0 : i32, i32, i32
  }
  func.func @transform_1(%arg0: i32) -> (i32, i32, i32) {
    %c0_i32 = arith.constant 0 : i32
    %c0_i32_0 = arith.constant 0 : i32
    %c0_i32_1 = arith.constant 0 : i32
    %c0_i32_2 = arith.constant 0 : i32
    return %c0_i32, %c0_i32_0, %c0_i32_1 : i32, i32, i32
  }
  func.func @transform_2(%arg0: i32) -> (i32, i32) {
    %c0_i32 = arith.constant 0 : i32
    %c0_i32_0 = arith.constant 0 : i32
    %c0_i32_1 = arith.constant 0 : i32
    return %c0_i32, %c0_i32_0 : i32, i32
  }
  func.func @transform_3(%arg0: i32) -> (i32, i32) {
    %c0_i32 = arith.constant 0 : i32
    %c0_i32_0 = arith.constant 0 : i32
    %c0_i32_1 = arith.constant 0 : i32
    return %c0_i32, %c0_i32_0 : i32, i32
  }
  func.func @transform_4(%arg0: i32) -> (i32, i32, i32) {
    %c0_i32 = arith.constant 0 : i32
    %c0_i32_0 = arith.constant 0 : i32
    %c0_i32_1 = arith.constant 0 : i32
    return %arg0, %c0_i32, %c0_i32_0 : i32, i32, i32
  }
}

</mosaic_0001>

<bundles_post_ra>
// kernel: tpu_custom_call.1
= control target key start
LH: loop header
LB: loop body
LE: loop exit
PB: predicated region body
PF: predicated region fallthrough
CT: control target
= control target key end

     0   :  { %9 = vsyncpa [#allocation3], 0  ;;  %s1459_s0 = inlined_call_operand.vmem [shape: f32[2,4,326], index: 0, kind: input, shape index: {}]   ;;  %s1460_s1 = inlined_call_operand.vmem [shape: bf16[9,8,4], index: 1, kind: input, shape index: {}]   ;;  %s1461_s2 = inlined_call_operand.vmem [shape: f32[8,1], index: 2, kind: input, shape index: {}]   ;;  %s1462_s3 = inlined_call_operand.vmem [shape: f32[8,1], index: 3, kind: input, shape index: {}]   ;;  %s1463_s4 = inlined_call_operand.hbm [shape: f32[2,8,288], index: 4, kind: output, shape index: {}]  }
   0x1   :  { %11 = vsyncpa [#allocation3 + $0x1], 0  ;;  %s1234_s15 = smov 0   ;;  %s1236_s16 = smov 0  }
   0x2   :  { %s1238_s17 = smov 0   ;;  %s1240_s18 = smov 0  }
   0x3 LB: > { %s1255_s19 = sadd.s32 4294967295, %s1198_s18   ;;  %s1040_s20 = sadd.s32 4294967294, %s1198_s18   ;;  %s1198_s18 = sphi %s1240_s18, %s1469_s18   ;;  %s1194_s17 = sphi %s1238_s17, %s1468_s17   ;;  %s1190_s16 = sphi %s1236_s16, %s1467_s16   ;;  %s1186_s15 = sphi %s1234_s15, %s1466_s15  }
   0x4   : > { %s1259_s21 = sadd.s32 1, %s1198_s18   ;;  %s113_s22 = sadd.s32 1, %s1194_s17 }
   0x5   : > { %s110_s23 = ssub.s32 %s1198_s18, %s1259_s21  ;;  %p123_p0 = scmp.ne.s32.totalorder %s1194_s17, %s1190_s16 }
   0x6   : > { %p111_p1 = scmp.eq.s32.totalorder %s110_s23, 0  ;;  %p124_p2 = scmp.eq.s32.totalorder %s1255_s19, 1 }
   0x7   : > { %p129_p3 = scmp.ne.s32.totalorder %s1190_s16, %s1186_s15  ;;  %p130_p4 = scmp.eq.s32.totalorder %s1040_s20, 1 }
   0x8   : > { %s1270_s24 = scalar_select %p111_p1, %s1194_s17, %s113_s22  }
   0x9   : > { %p1272_p5 = por %p124_p2, %p123_p0  ;;  %p1276_p6 = por %p130_p4, %p129_p3 }
   0xa   : > { %p1043_p7 = scmp.ge.s32.totalorder %s1198_s18, 1  ;;  %p165_p8 = scmp.lt.s32.totalorder %s1198_s18, 3 }
   0xc   : > { %p166_p9 = pnand %p1043_p7, %p165_p8 }
   0xd   : > { %p191_p10 = scmp.lt.s32.totalorder (!%p166_p9), %s1255_s19, 1  ;;  %s1200_s6 = smov (!%p166_p9), 127  }
   0xe   : > { %169 = sbr.rel (%p166_p9) target bundleno = 403 (0x193), region = 36  ;;  %s1201_s7 = smov (!%p166_p9), 126  }
   0xf   : > { %s1202_s8 = smov (!%p166_p9), 110   ;;  %s1203_s9 = smov (!%p166_p9), 109  }
  0x10   : > { %s1204_s10 = smov (!%p166_p9), 108   ;;  %s1205_s11 = smov (!%p166_p9), 92  }
  0x11   : > { %s1206_s12 = smov (!%p166_p9), 91   ;;  %s1207_s13 = smov (!%p166_p9), 90  }
  0x12   : > { %s1085_s30 = smul.u32 (!%p166_p9), 24, %s1255_s19  ;;  %s1156_s20 = scalar_lea.hbm (!%p166_p9), %s1463_s4, 48 }
  0x13   : > { %s192_s27 = scalar_select %p191_p10, %s1255_s19, 1  ;;  %vm248_vm0 = vcmask 1041408   ;;  %vm244_vm1 = vcmask 31744   ;;  %v1322_v63 = vld [vmem:[%s1460_s1] sm:$0xf]  ;;  %vm375_vm2 = vcmask 1031168  }
  0x14   : > { %vm241_vm3 = vcmask 1039360   ;;  %vm459_vm4 = vcmask 900096   ;;  %vm543_vm5 = vcmask 891904   ;;  %vm627_vm6 = vcmask 883712  }
  0x15   : > { %s1084_s28 = smul.u32 12, %s192_s27  ;;  %vm711_vm7 = vcmask 752640   ;;  %vm795_vm8 = vcmask 744448   ;;  %vm879_vm9 = vcmask 736256   ;;  %vm962_vm12 = vcmask 261120  }
  0x17   : > { %s1287_s5 = scalar_lea.vmem %s1459_s0, %s1084_s28  ;;  %s188_s28 = sand.u32 1, %s1190_s16  }
  0x18   : > { %v198_v0 = vld [vmem:[%s1287_s5 + $0x8] sm:$0xf]  ;;  %v1291_v1 = vld [vmem:[%s1287_s5] sm:$0xff]  ;;  %s1083_s29 = smul.u32 24, %s188_s28 }
  0x19   : > { %203 = vst [vmem:[#allocation1 + $0x10] ss:$2 sm:$0xff] %v198_v0  ;;  %v215_v2 = vld [vmem:[%s1287_s5 + $0x8] sm:$0xf] }
  0x1a   : > { %201 = vst [vmem:[#allocation1] ss:$2 sm:$0xff] %v1291_v1  ;;  %v349_v6 = vld [vmem:[%s1287_s5 + $0x8] sm:$0xf] }
  0x1b   : > { %v433_v12 = vld [vmem:[%s1287_s5 + $0x8] sm:$0xf] }
  0x1c   : > { %v517_v19 = vld [vmem:[%s1287_s5 + $0x8] sm:$0xf] }
  0x1d   : > { %v601_v26 = vld [vmem:[%s1287_s5 + $0x8] sm:$0xf] }
  0x1e   : > { %v685_v33 = vld [vmem:[%s1287_s5 + $0x8] sm:$0xf] }
  0x1f   : > { %v769_v40 = vld [vmem:[%s1287_s5 + $0x8] sm:$0xf] }
  0x20   : > { %v1295_v3 = vld.sshfl [vmem:[#allocation1 + $0x10] sm:$0xff pattern:$0x75316420]  ;;  %v853_v47 = vld [vmem:[%s1287_s5 + $0x8] sm:$0xf] }
  0x21   : > { %220 = vst [vmem:[#allocation1 + $0x10] ss:$2 sm:$0xff] %v215_v2  ;;  %v1297_v4 = vld.sshfl [vmem:[#allocation1] sm:$0xff pattern:$0x75316420] }
  0x22   : > { %v1299_v5 = vld.sshfl [vmem:[#allocation1 + $0x8] sm:$0xff pattern:$0x75316420]  ;;  %v210_v61 = vpack.c.bf16 %v1297_v4, %v1297_v4 }
  0x23   : > { %218 = vst [vmem:[#allocation1] ss:$2 sm:$0xff] %v1291_v1 }
  0x24   : > { %v301_v62 = vsel %vm248_vm0, %v210_v61, 0 }
  0x25   : > { %316 = vmatpush.bf16.msra.mxu3 %v301_v62 }
  0x28   : > { %v223_v7 = vld.sshfl [vmem:[#allocation1 + $0x10] sm:$0xff pattern:$0x75316420]  ;;  %1049 = vmatmul.msk.bf16.vlgmr.msra.gmra.mxu3 %vm244_vm1, %v1322_v63 }
  0x29   : > { %v229_v8 = vpack.c.bf16 %v223_v7, %v223_v7  ;;  %354 = vst [vmem:[#allocation1 + $0x10] ss:$2 sm:$0xff] %v349_v6  ;;  %v212_v6 = vpack.c.bf16 %v1295_v3, %v1295_v3 }
  0x2a   : > { %v222_v9 = vld.sshfl [vmem:[#allocation1 + $0x8] sm:$0xff pattern:$0x75316420]  ;;  %v221_v10 = vld.sshfl [vmem:[#allocation1] sm:$0xff pattern:$0x75316420] }
  0x2b   : > { %239 = vrot.lane.b32.xlu0 %v229_v8, %s1200_s6  ;;  %v228_v11 = vpack.c.bf16 %v222_v9, %v222_v9  ;;  %352 = vst [vmem:[#allocation1] ss:$2 sm:$0xff] %v1291_v1  ;;  %v227_v13 = vpack.c.bf16 %v221_v10, %v221_v10  ;;  %v1333_v8 = vld [vmem:[%s1460_s1 + $0x8] sm:$0xf] }
  0x2d   : > { %237 = vrot.lane.b32.xlu1 %v228_v11, %s1200_s6  ;;  %v1045_v11 = vld [vmem:[%s1460_s1 + $0x4] sm:$0xf] }
  0x30   : > { %v357_v14 = vld.sshfl [vmem:[#allocation1 + $0x10] sm:$0xff pattern:$0x75316420] }
  0x31   : > { %438 = vst [vmem:[#allocation1 + $0x10] ss:$2 sm:$0xff] %v433_v12  ;;  %v363_v24 = vpack.c.bf16 %v357_v14, %v357_v14  ;;  %v307_v12 = vsel %vm248_vm0, %v212_v6, 0  ;;  %v211_v14 = vpack.c.bf16 %v1299_v5, %v1299_v5 }
  0x32   : > { %v355_v15 = vld.sshfl [vmem:[#allocation1] sm:$0xff pattern:$0x75316420]  ;;  %v356_v16 = vld.sshfl [vmem:[#allocation1 + $0x8] sm:$0xff pattern:$0x75316420] }
  0x33   : > { %v361_v17 = vpack.c.bf16 %v355_v15, %v355_v15  ;;  %235 = vrot.lane.b32.xlu0 %v227_v13, %s1200_s6  ;;  %v362_v18 = vpack.c.bf16 %v356_v16, %v356_v16  ;;  %436 = vst [vmem:[#allocation1] ss:$2 sm:$0xff] %v1291_v1 }
  0x35   : > { %369 = vrot.lane.b32.xlu1 %v361_v17, %s1201_s7  ;;  %371 = vrot.lane.b32.xlu2 %v362_v18, %s1201_s7  ;;  %v304_v17 = vsel %vm248_vm0, %v211_v14, 0  ;;  %v1208_v14 = vmov 0  }
  0x36   : > { %1134 = vset.pattern.permute.xlu0 %v1208_v14  ;;  %1135 = vset.pattern.permute.xlu1 %v1208_v14 }
  0x38   : > { %v441_v20 = vld.sshfl [vmem:[#allocation1 + $0x10] sm:$0xff pattern:$0x75316420] }
  0x39   : > { %v447_v21 = vpack.c.bf16 %v441_v20, %v441_v20  ;;  %522 = vst [vmem:[#allocation1 + $0x10] ss:$2 sm:$0xff] %v517_v19 }
  0x3a   : > { %v439_v22 = vld.sshfl [vmem:[#allocation1] sm:$0xff pattern:$0x75316420]  ;;  %v440_v23 = vld.sshfl [vmem:[#allocation1 + $0x8] sm:$0xff pattern:$0x75316420] }
  0x3b   : > { %v446_v25 = vpack.c.bf16 %v440_v23, %v440_v23  ;;  %520 = vst [vmem:[#allocation1] ss:$2 sm:$0xff] %v1291_v1  ;;  %v445_v31 = vpack.c.bf16 %v439_v22, %v439_v22 }
  0x3d   : > { %457 = vrot.lane.b32.xlu1 %v447_v21, %s1202_s8  ;;  %455 = vrot.lane.b32.xlu0 %v446_v25, %s1202_s8 }
  0x3e   : > { %373 = vrot.lane.b32.xlu2 %v363_v24, %s1201_s7  ;;  %s976_s7 = scalar_lea.hbm %s1463_s4, %s1085_s30 }
  0x40   : > { %v525_v27 = vld.sshfl [vmem:[#allocation1 + $0x10] sm:$0xff pattern:$0x75316420] }
  0x41   : > { %v531_v28 = vpack.c.bf16 %v525_v27, %v525_v27  ;;  %606 = vst [vmem:[#allocation1 + $0x10] ss:$2 sm:$0xff] %v601_v26 }
  0x42   : > { %v524_v29 = vld.sshfl [vmem:[#allocation1 + $0x8] sm:$0xff pattern:$0x75316420]  ;;  %v523_v30 = vld.sshfl [vmem:[#allocation1] sm:$0xff pattern:$0x75316420] }
  0x43   : > { %v529_v32 = vpack.c.bf16 %v523_v30, %v523_v30  ;;  %604 = vst [vmem:[#allocation1] ss:$2 sm:$0xff] %v1291_v1  ;;  %v530_v37 = vpack.c.bf16 %v524_v29, %v524_v29  ;;  %v1056_v30 = vld [vmem:[%s1460_s1 + $0xc] sm:$0xf] }
  0x45   : > { %537 = vrot.lane.b32.xlu1 %v529_v32, %s1203_s9  ;;  %541 = vrot.lane.b32.xlu0 %v531_v28, %s1203_s9 }
  0x46   : > { %453 = vrot.lane.b32.xlu2 %v445_v31, %s1202_s8  ;;  %s190_s8 = scalar_lea.vmem [#allocation2], %s1083_s29 }
  0x47   : > { %s978_s19 = sshll.u32 %s190_s8, 4  ;;  %s979_s19 = int_to_ptr.vmem [resolvable:$true] %s978_s19 }
  0x48   : > { %v609_v34 = vld.sshfl [vmem:[#allocation1 + $0x10] sm:$0xff pattern:$0x75316420] }
  0x49   : > { %690 = vst [vmem:[#allocation1 + $0x10] ss:$2 sm:$0xff] %v685_v33  ;;  %v615_v42 = vpack.c.bf16 %v609_v34, %v609_v34 }
  0x4a   : > { %v608_v35 = vld.sshfl [vmem:[#allocation1 + $0x8] sm:$0xff pattern:$0x75316420]  ;;  %v607_v36 = vld.sshfl [vmem:[#allocation1] sm:$0xff pattern:$0x75316420] }
  0x4b   : > { %v614_v38 = vpack.c.bf16 %v608_v35, %v608_v35  ;;  %v613_v39 = vpack.c.bf16 %v607_v36, %v607_v36  ;;  %688 = vst [vmem:[#allocation1] ss:$2 sm:$0xff] %v1291_v1 }
  0x4d   : > { %623 = vrot.lane.b32.xlu1 %v614_v38, %s1204_s10  ;;  %621 = vrot.lane.b32.xlu0 %v613_v39, %s1204_s10 }
  0x4e   : > { %539 = vrot.lane.b32.xlu2 %v530_v37, %s1203_s9  ;;  %s980_s9 = sshll.u32 %s976_s7, 4  ;;  %s981_s9 = int_to_ptr.hbm [resolvable:$true] %s980_s9 }
  0x50   : > { %v693_v41 = vld.sshfl [vmem:[#allocation1 + $0x10] sm:$0xff pattern:$0x75316420] }
  0x51   : > { %774 = vst [vmem:[#allocation1 + $0x10] ss:$2 sm:$0xff] %v769_v40  ;;  %v699_v52 = vpack.c.bf16 %v693_v41, %v693_v41 }
  0x52   : > { %v692_v43 = vld.sshfl [vmem:[#allocation1 + $0x8] sm:$0xff pattern:$0x75316420]  ;;  %v691_v44 = vld.sshfl [vmem:[#allocation1] sm:$0xff pattern:$0x75316420] }
  0x53   : > { %v698_v45 = vpack.c.bf16 %v692_v43, %v692_v43  ;;  %v697_v46 = vpack.c.bf16 %v691_v44, %v691_v44  ;;  %772 = vst [vmem:[#allocation1] ss:$2 sm:$0xff] %v1291_v1  ;;  %v1064_v44 = vld [vmem:[%s1460_s1 + $0x14] sm:$0xf] }
  0x55   : > { %625 = vrot.lane.b32.xlu1 %v615_v42, %s1204_s10  ;;  %707 = vrot.lane.b32.xlu0 %v698_v45, %s1205_s11  ;;  %s965_s10 = scalar_lea.sflag [#allocation3], %s188_s28 }
  0x56   : > { %705 = vrot.lane.b32.xlu2 %v697_v46, %s1205_s11 }
  0x58   : > { %v777_v48 = vld.sshfl [vmem:[#allocation1 + $0x10] sm:$0xff pattern:$0x75316420] }
  0x59   : > { %v783_v49 = vpack.c.bf16 %v777_v48, %v777_v48  ;;  %858 = vst [vmem:[#allocation1 + $0x10] ss:$2 sm:$0xff] %v853_v47 }
  0x5a   : > { %v775_v50 = vld.sshfl [vmem:[#allocation1] sm:$0xff pattern:$0x75316420]  ;;  %v776_v51 = vld.sshfl [vmem:[#allocation1 + $0x8] sm:$0xff pattern:$0x75316420] }
  0x5b   : > { %v782_v53 = vpack.c.bf16 %v776_v51, %v776_v51  ;;  %856 = vst [vmem:[#allocation1] ss:$2 sm:$0xff] %v1291_v1  ;;  %v781_v57 = vpack.c.bf16 %v775_v50, %v775_v50 }
  0x5d   : > { %793 = vrot.lane.b32.xlu1 %v783_v49, %s1206_s12  ;;  %791 = vrot.lane.b32.xlu0 %v782_v53, %s1206_s12 }
  0x5e   : > { %709 = vrot.lane.b32.xlu2 %v699_v52, %s1205_s11  ;;  %s1150_s11 = sshra.s32 %s981_s9, 4  ;;  %s1151_s11 = int_to_ptr.hbm [resolvable:$true] %s1150_s11 }
  0x5f   : > { %p1157_p0 = scmp.lt.s32.totalorder %s1151_s11, %s1463_s4 }
  0x60   : > { %v861_v54 = vld.sshfl [vmem:[#allocation1 + $0x10] sm:$0xff pattern:$0x75316420] }
  0x61   : > { %v867_v55 = vpack.c.bf16 %v861_v54, %v861_v54 }
  0x62   : > { %v859_v56 = vld.sshfl [vmem:[#allocation1] sm:$0xff pattern:$0x75316420]  ;;  %v860_v59 = vld.sshfl [vmem:[#allocation1 + $0x8] sm:$0xff pattern:$0x75316420] }
  0x63   : > { %v865_v58 = vpack.c.bf16 %v859_v56, %v859_v56  ;;  %v866_v60 = vpack.c.bf16 %v860_v59, %v860_v59  ;;  %v1060_v56 = vld [vmem:[%s1460_s1 + $0x10] sm:$0xf] }
  0x65   : > { %877 = vrot.lane.b32.xlu0 %v867_v55, %s1207_s13  ;;  %873 = vrot.lane.b32.xlu1 %v865_v58, %s1207_s13 }
  0x66   : > { %789 = vrot.lane.b32.xlu2 %v781_v57, %s1206_s12  ;;  %s1152_s12 = scalar_lea.hbm %s1151_s11, 24 }
  0x67   : > { %p1153_p11 = scmp.ne.s32.totalorder %s1151_s11, %s1152_s12  ;;  %p1158_p1 = scmp.lt.s32.totalorder %s1156_s20, %s1152_s12 }
  0x69   : > { %p1154_p12 = pnand %p1153_p11, %p1272_p5  ;;  %p1159_p2 = por %p1158_p1, %p1157_p0 }
  0x6b   : > { %p1155_p13 = pneg %p1154_p12 }
  0x6d   : > { %p1160_p3 = pnand %p1159_p2, %p1155_p13 }
  0x6e   : > { %875 = vrot.lane.b32.xlu2 %v866_v60, %s1207_s13 }
  0x8f   : > { %v372_v0 = vpop.permute.xlu2 %371 }
  0x98   : > { %v374_v1 = vpop.permute.xlu2 %373 }
  0x99   : > { %v377_v2 = vsel %vm375_vm2, %v372_v0, %v374_v1  ;;  %v388_v21 = vsel %vm248_vm0, %v374_v1, 0 }
  0x9a   : > { %v385_v4 = vsel %vm248_vm0, %v377_v2, 0 }
  0x9b   : > { %410 = vmatpush.bf16.msrb.mxu3 %v385_v4 }
  0x9d   : > { %v240_v7 = vpop.permute.xlu0 %239 }
  0x9e   : > { %v256_v9 = vsel %vm248_vm0, %v240_v7, 0  ;;  %1054 = vmatmul.msk.bf16.vlgmr.msrb.gmra.mxu3 %vm244_vm1, %v1333_v8 }
  0x9f   : > { %v238_v10 = vpop.permute.xlu1 %237  ;;  %291 = vmatpush.bf16.msra.mxu2 %v256_v9 }
  0xa0   : > { %v243_v3 = vsel %vm241_vm3, %v238_v10, %v240_v7  ;;  %v454_v5 = vpop.permute.xlu2 %453 }
  0xa1   : > { %v253_v13 = vsel %vm248_vm0, %v243_v3, 0 }
  0xa2   : > { %278 = vmatpush.bf16.msra.mxu1 %v253_v13  ;;  %1048 = vmatmul.msk.bf16.vlgmr.msra.gmra.mxu2 %vm244_vm1, %v1045_v11  ;;  %v948_v13 = vld [vmem:[%s1462_s3] sm:$0xff] }
  0xa3   : > { %951 = vperm.xlu1 %1135, %v948_v13  }
  0xa5   : > { %1047 = vmatmul.msk.bf16.vlgmr.msra.gmra.mxu1 %vm244_vm1, %v1045_v11  ;;  %v236_v15 = vpop.permute.xlu0 %235 }
  0xa6   : > { %342 = vmatpush.bf16.msrb.mxu1 %v307_v12  ;;  %v242_v16 = vsel %vm241_vm3, %v236_v15, %v238_v10  ;;  %v1072_v10 = vld [vmem:[%s1460_s1 + $0x1c] sm:$0xf]  ;;  %v936_v12 = vld [vmem:[%s1461_s2] sm:$0xff] }
  0xa7   : > { %v370_v18 = vpop.permute.xlu1 %369  ;;  %v250_v19 = vsel %vm248_vm0, %v242_v16, 0  ;;  %939 = vperm.xlu0 %1134, %v936_v12   ;;  %v1076_v15 = vld [vmem:[%s1460_s1 + $0x20] sm:$0xf] }
  0xa8   : > { %265 = vmatpush.bf16.msra.mxu0 %v250_v19  ;;  %v376_v20 = vsel %vm375_vm2, %v370_v18, %v372_v0  ;;  %v540_v31 = vpop.permute.xlu2 %539  ;;  %v1068_v0 = vld [vmem:[%s1460_s1 + $0x18] sm:$0xf] }
  0xa9   : > { %v382_v22 = vsel %vm248_vm0, %v376_v20, 0 }
  0xaa   : > { %397 = vmatpush.bf16.msrb.mxu2 %v382_v22 }
  0xab   : > { %1046 = vmatmul.msk.bf16.vlgmr.msra.gmra.mxu0 %vm244_vm1, %v1045_v11  ;;  %v318_v16 = vpop.f32.mrf.mxu3 }
  0xac   : > { %329 = vmatpush.bf16.msrb.mxu0 %v304_v17 }
  0xaf   : > { %v458_v23 = vpop.permute.xlu1 %457  ;;  %v456_v24 = vpop.permute.xlu0 %455 }
  0xb0   : > { %423 = vmatpush.bf16.msra.mxu0 %v388_v21  ;;  %v472_v25 = vsel %vm248_vm0, %v458_v23, 0  ;;  %v460_v26 = vsel %vm459_vm4, %v454_v5, %v456_v24  ;;  %v461_v27 = vsel %vm459_vm4, %v456_v24, %v458_v23  ;;  %v706_v39 = vpop.permute.xlu2 %705 }
  0xb1   : > { %v466_v28 = vsel %vm248_vm0, %v460_v26, 0  ;;  %v469_v29 = vsel %vm248_vm0, %v461_v27, 0  ;;  %507 = vmatpush.bf16.msra.mxu3 %v472_v25 }
  0xb2   : > { %1053 = vmatmul.msk.bf16.vlgmr.msrb.gmra.mxu2 %vm244_vm1, %v1333_v8  ;;  %481 = vmatpush.bf16.msra.mxu1 %v466_v28 }
  0xb3   : > { %494 = vmatpush.bf16.msra.mxu2 %v469_v29  ;;  %v320_v17 = vpop.f32.mrf.mxu3 }
  0xb4   : > { %1059 = vmatmul.msk.bf16.vlgmr.msra.gmra.mxu3 %vm244_vm1, %v1056_v30 }
  0xb5   : > { %1051 = vmatmul.msk.bf16.vlgmr.msrb.gmra.mxu1 %vm244_vm1, %v1322_v63 }
  0xb7   : > { %v538_v32 = vpop.permute.xlu1 %537  ;;  %v542_v33 = vpop.permute.xlu0 %541 }
  0xb8   : > { %v544_v34 = vsel %vm543_vm5, %v538_v32, %v540_v31  ;;  %v545_v35 = vsel %vm543_vm5, %v540_v31, %v542_v33  ;;  %v556_v36 = vsel %vm248_vm0, %v542_v33, 0  ;;  %v710_v45 = vpop.permute.xlu2 %709 }
  0xb9   : > { %v550_v37 = vsel %vm248_vm0, %v544_v34, 0  ;;  %v553_v38 = vsel %vm248_vm0, %v545_v35, 0  ;;  %591 = vmatpush.bf16.msrb.mxu2 %v556_v36  ;;  %v724_v1 = vsel %vm248_vm0, %v710_v45, 0 }
  0xba   : > { %578 = vmatpush.bf16.msrb.mxu1 %v553_v38 }
  0xbb   : > { %1050 = vmatmul.msk.bf16.vlgmr.msrb.gmra.mxu0 %vm244_vm1, %v1322_v63 }
  0xbc   : > { %565 = vmatpush.bf16.msrb.mxu0 %v550_v37 }
  0xbf   : > { %v624_v40 = vpop.permute.xlu1 %623  ;;  %v622_v41 = vpop.permute.xlu0 %621 }
  0xc0   : > { %v628_v42 = vsel %vm627_vm6, %v622_v41, %v624_v40  ;;  %v790_v55 = vpop.permute.xlu2 %789 }
  0xc1   : > { %v634_v43 = vsel %vm248_vm0, %v628_v42, 0 }
  0xc2   : > { %1058 = vmatmul.msk.bf16.vlgmr.msra.gmra.mxu2 %vm244_vm1, %v1056_v30  ;;  %649 = vmatpush.bf16.msrb.mxu3 %v634_v43 }
  0xc5   : > { %1057 = vmatmul.msk.bf16.vlgmr.msra.gmra.mxu1 %vm244_vm1, %v1056_v30  ;;  %1065 = vmatmul.msk.bf16.vlgmr.msrb.gmra.mxu3 %vm244_vm1, %v1064_v44 }
  0xc7   : > { %v626_v46 = vpop.permute.xlu1 %625  ;;  %v708_v47 = vpop.permute.xlu0 %707 }
  0xc8   : > { %v629_v48 = vsel %vm627_vm6, %v624_v40, %v626_v46  ;;  %v640_v49 = vsel %vm248_vm0, %v626_v46, 0  ;;  %v712_v50 = vsel %vm711_vm7, %v706_v39, %v708_v47  ;;  %v713_v51 = vsel %vm711_vm7, %v708_v47, %v710_v45  ;;  %v876_v2 = vpop.permute.xlu2 %875 }
  0xc9   : > { %v637_v52 = vsel %vm248_vm0, %v629_v48, 0  ;;  %v718_v53 = vsel %vm248_vm0, %v712_v50, 0  ;;  %v721_v54 = vsel %vm248_vm0, %v713_v51, 0  ;;  %675 = vmatpush.bf16.msra.mxu1 %v640_v49 }
  0xca   : > { %733 = vmatpush.bf16.msra.mxu2 %v718_v53  ;;  %746 = vmatpush.bf16.msra.mxu3 %v721_v54 }
  0xcb   : > { %1055 = vmatmul.msk.bf16.vlgmr.msra.gmra.mxu0 %vm244_vm1, %v1333_v8 }
  0xcc   : > { %662 = vmatpush.bf16.msra.mxu0 %v637_v52 }
  0xcf   : > { %v794_v57 = vpop.permute.xlu1 %793  ;;  %v792_v58 = vpop.permute.xlu0 %791 }
  0xd0   : > { %v808_v59 = vsel %vm248_vm0, %v794_v57, 0  ;;  %v796_v60 = vsel %vm795_vm8, %v790_v55, %v792_v58  ;;  %v797_v61 = vsel %vm795_vm8, %v792_v58, %v794_v57 }
  0xd1   : > { %v805_v62 = vsel %vm248_vm0, %v797_v61, 0  ;;  %843 = vmatpush.bf16.msrb.mxu3 %v808_v59  ;;  %v802_v63 = vsel %vm248_vm0, %v796_v60, 0 }
  0xd2   : > { %1063 = vmatmul.msk.bf16.vlgmr.msrb.gmra.mxu2 %vm244_vm1, %v1060_v56 }
  0xd3   : > { %830 = vmatpush.bf16.msrb.mxu2 %v805_v62 }
  0xd5   : > { %1062 = vmatmul.msk.bf16.vlgmr.msrb.gmra.mxu1 %vm244_vm1, %v1060_v56  ;;  %1070 = vmatmul.msk.bf16.vlgmr.msra.gmra.mxu3 %vm244_vm1, %v1068_v0 }
  0xd6   : > { %817 = vmatpush.bf16.msrb.mxu1 %v802_v63 }
  0xd7   : > { %v878_v4 = vpop.permute.xlu0 %877  ;;  %v874_v9 = vpop.permute.xlu1 %873 }
  0xd8   : > { %v881_v6 = vsel %vm879_vm9, %v876_v2, %v878_v4  ;;  %v892_v7 = vsel %vm248_vm0, %v878_v4, 0  ;;  %v880_v11 = vsel %vm879_vm9, %v874_v9, %v876_v2 }
  0xd9   : > { %v889_v8 = vsel %vm248_vm0, %v881_v6, 0  ;;  %v886_v3 = vsel %vm248_vm0, %v880_v11, 0 }
  0xdb   : > { %1061 = vmatmul.msk.bf16.vlgmr.msrb.gmra.mxu0 %vm244_vm1, %v1060_v56 }
  0xdc   : > { %759 = vmatpush.bf16.msrb.mxu0 %v724_v1 }
  0xe2   : > { %1069 = vmatmul.msk.bf16.vlgmr.msra.gmra.mxu2 %vm244_vm1, %v1068_v0 }
  0xe3   : > { %927 = vmatpush.bf16.msra.mxu2 %v892_v7 }
  0xe5   : > { %1067 = vmatmul.msk.bf16.vlgmr.msra.gmra.mxu1 %vm244_vm1, %v1064_v44  ;;  %1075 = vmatmul.msk.bf16.vlgmr.msrb.gmra.mxu3 %vm244_vm1, %v1072_v10 }
  0xe6   : > { %914 = vmatpush.bf16.msra.mxu1 %v889_v8 }
  0xeb   : > { %1066 = vmatmul.msk.bf16.vlgmr.msra.gmra.mxu0 %vm244_vm1, %v1064_v44 }
  0xec   : > { %901 = vmatpush.bf16.msra.mxu0 %v886_v3 }
  0xf2   : > { %1074 = vmatmul.msk.bf16.vlgmr.msrb.gmra.mxu2 %vm244_vm1, %v1072_v10 }
  0xf5   : > { %1073 = vmatmul.msk.bf16.vlgmr.msrb.gmra.mxu1 %vm244_vm1, %v1072_v10 }
  0xfb   : > { %1071 = vmatmul.msk.bf16.vlgmr.msrb.gmra.mxu0 %vm244_vm1, %v1068_v0 }
 0x102   : > { %1079 = vmatmul.msk.bf16.vlgmr.msra.gmra.mxu2 %vm244_vm1, %v1076_v15 }
 0x105   : > { %1078 = vmatmul.msk.bf16.vlgmr.msra.gmra.mxu1 %vm244_vm1, %v1076_v15 }
 0x10b   : > { %1077 = vmatmul.msk.bf16.vlgmr.msra.gmra.mxu0 %vm244_vm1, %v1076_v15 }
 0x121   : > { %v412_v18 = vpop.f32.mrf.mxu3 }
 0x122   : > { %v280_v19 = vpop.f32.mrf.mxu1 }
 0x125   : > { %v293_v20 = vpop.f32.mrf.mxu2 }
 0x128   : > { %v267_v21 = vpop.f32.mrf.mxu0 }
 0x129   : > { %v319_v22 = vadd.f32 %v318_v16, %v267_v21  ;;  %v414_v5 = vpop.f32.mrf.mxu3 }
 0x12a   : > { %v282_v23 = vpop.f32.mrf.mxu1 }
 0x12d   : > { %v295_v24 = vpop.f32.mrf.mxu2 }
 0x130   : > { %v269_v25 = vpop.f32.mrf.mxu0 }
 0x132   : > { %v344_v26 = vpop.f32.mrf.mxu1 }
 0x133   : > { %v345_v27 = vadd.f32 %v344_v26, %v293_v20 }
 0x135   : > { %v399_v28 = vpop.f32.mrf.mxu2 }
 0x136   : > { %v429_v29 = vadd.f32 %v399_v28, %v319_v22  ;;  %v952_v22 = vpop.permute.xlu1 %951 }
 0x137   : > { %v509_v30 = vpop.f32.mrf.mxu3 }
 0x138   : > { %v331_v31 = vpop.f32.mrf.mxu0 }
 0x139   : > { %v332_v32 = vadd.f32 %v331_v31, %v280_v19 }
 0x13a   : > { %v346_v33 = vpop.f32.mrf.mxu1 }
 0x13b   : > { %v430_v34 = vadd.f32 %v412_v18, %v332_v32  ;;  %v940_v18 = vpop.permute.xlu0 %939 }
 0x13d   : > { %v401_v35 = vpop.f32.mrf.mxu2 }
 0x13f   : > { %v511_v36 = vpop.f32.mrf.mxu3 }
 0x140   : > { %v333_v37 = vpop.f32.mrf.mxu0 }
 0x142   : > { %v483_v38 = vpop.f32.mrf.mxu1 }
 0x143   : > { %v513_v10 = vadd.f32 %v483_v38, %v429_v29 }
 0x145   : > { %v496_v39 = vpop.f32.mrf.mxu2 }
 0x146   : > { %v514_v2 = vadd.f32 %v496_v39, %v430_v34 }
 0x148   : > { %v425_v40 = vpop.f32.mrf.mxu0  ;;  %v651_v41 = vpop.f32.mrf.mxu3 }
 0x149   : > { %v431_v42 = vadd.f32 %v425_v40, %v345_v27 }
 0x14a   : > { %v485_v43 = vpop.f32.mrf.mxu1 }
 0x14b   : > { %v515_v44 = vadd.f32 %v509_v30, %v431_v42 }
 0x14d   : > { %v498_v45 = vpop.f32.mrf.mxu2 }
 0x150   : > { %v427_v46 = vpop.f32.mrf.mxu0  ;;  %v653_v47 = vpop.f32.mrf.mxu3 }
 0x152   : > { %v580_v48 = vpop.f32.mrf.mxu1 }
 0x153   : > { %v598_v6 = vadd.f32 %v580_v48, %v514_v2 }
 0x155   : > { %v593_v49 = vpop.f32.mrf.mxu2 }
 0x156   : > { %v599_v9 = vadd.f32 %v593_v49, %v515_v44 }
 0x158   : > { %v567_v50 = vpop.f32.mrf.mxu0  ;;  %v748_v51 = vpop.f32.mrf.mxu3 }
 0x159   : > { %v597_v12 = vadd.f32 %v567_v50, %v513_v10 }
 0x15a   : > { %v582_v52 = vpop.f32.mrf.mxu1 }
 0x15b   : > { %v681_v19 = vadd.f32 %v651_v41, %v597_v12 }
 0x15d   : > { %v595_v53 = vpop.f32.mrf.mxu2 }
 0x160   : > { %v569_v54 = vpop.f32.mrf.mxu0  ;;  %v750_v55 = vpop.f32.mrf.mxu3 }
 0x162   : > { %v677_v56 = vpop.f32.mrf.mxu1 }
 0x163   : > { %v683_v3 = vadd.f32 %v677_v56, %v599_v9 }
 0x165   : > { %v735_v57 = vpop.f32.mrf.mxu2 }
 0x166   : > { %v765_v5 = vadd.f32 %v735_v57, %v681_v19 }
 0x168   : > { %v664_v58 = vpop.f32.mrf.mxu0  ;;  %v845_v59 = vpop.f32.mrf.mxu3 }
 0x169   : > { %v682_v8 = vadd.f32 %v664_v58, %v598_v6 }
 0x16a   : > { %v679_v60 = vpop.f32.mrf.mxu1 }
 0x16b   : > { %v766_v13 = vadd.f32 %v748_v51, %v682_v8 }
 0x16d   : > { %v737_v61 = vpop.f32.mrf.mxu2 }
 0x170   : > { %v666_v62 = vpop.f32.mrf.mxu0  ;;  %v847_v63 = vpop.f32.mrf.mxu3 }
 0x172   : > { %v819_v0 = vpop.f32.mrf.mxu1 }
 0x173   : > { %v849_v26 = vadd.f32 %v819_v0, %v765_v5 }
 0x175   : > { %v832_v1 = vpop.f32.mrf.mxu2 }
 0x176   : > { %v850_v16 = vadd.f32 %v832_v1, %v766_v13 }
 0x178   : > { %v761_v4 = vpop.f32.mrf.mxu0 }
 0x179   : > { %v767_v14 = vadd.f32 %v761_v4, %v683_v3 }
 0x17a   : > { %v821_v7 = vpop.f32.mrf.mxu1 }
 0x17b   : > { %v851_v21 = vadd.f32 %v845_v59, %v767_v14 }
 0x17d   : > { %v834_v11 = vpop.f32.mrf.mxu2 }
 0x180   : > { %v763_v15 = vpop.f32.mrf.mxu0 }
 0x182   : > { %v916_v17 = vpop.f32.mrf.mxu1 }
 0x183   : > { %v934_v20 = vadd.f32 %v916_v17, %v850_v16 }
 0x185   : > { %v943_v23 = vadd.f32 %v940_v18, %v934_v20  ;;  %v929_v24 = vpop.f32.mrf.mxu2 }
 0x186   : > { %v935_v25 = vadd.f32 %v929_v24, %v851_v21 }
 0x187   : > { %vm946_vm10 = vcmp.gt.f32.partialorder %v943_v23, 0.0  ;;  %v955_v27 = vmul.f32 %v952_v22, %v943_v23 }
 0x188   : > { %v944_v28 = vadd.f32 %v940_v18, %v935_v25  ;;  %v903_v29 = vpop.f32.mrf.mxu0 }
 0x189   : > { %v958_v30 = vsel %vm946_vm10, %v943_v23, %v955_v27  ;;  %v933_v31 = vadd.f32 %v903_v29, %v849_v26 }
 0x18a   : > { %961 = vst [vmem:[%s190_s8 + $0x8] sm:$0xff] %v958_v30  ;;  %vm947_vm11 = vcmp.gt.f32.partialorder %v944_v28, 0.0  ;;  %v956_v32 = vmul.f32 %v952_v22, %v944_v28  ;;  %v918_v33 = vpop.f32.mrf.mxu1 }
 0x18b   : > { %v942_v34 = vadd.f32 %v940_v18, %v933_v31 }
 0x18c   : > { %v959_v35 = vsel %vm947_vm11, %v944_v28, %v956_v32 }
 0x18d   : > { %vm945_vm13 = vcmp.gt.f32.partialorder %v942_v34, 0.0  ;;  %v954_v36 = vmul.f32 %v952_v22, %v942_v34  ;;  %v931_v37 = vpop.f32.mrf.mxu2  ;;  %963 = vst.msk [vmem:[%s190_s8 + $0x10] sm:$0xff] %vm962_vm12, %v959_v35 }
 0x18f   : > { %v957_v38 = vsel %vm945_vm13, %v942_v34, %v954_v36 }
 0x190   : > { %960 = vst [vmem:[%s190_s8] sm:$0xff] %v957_v38  ;;  %v905_v39 = vpop.f32.mrf.mxu0 }
 0x191   : > { %1163 = shalt.err (!%p1160_p3)
}
 0x192   : > { %1086 = dma.vmem_to_hbm [thread:$0]  (%p1272_p5), %s979_s19, 384, %s981_s9, %s965_s10  }
 0x193 PF: > { %p1092_p4 = scmp.ge.s32.totalorder %s1198_s18, 2  ;;  %s992_s27 = sand.u32 1, %s1186_s15  }
 0x194   : > { %s993_s28 = scalar_lea.sflag [#allocation3], %s992_s27 }
 0x195   : > { %p1089_p7 = pnand %p1092_p4, %p1276_p6 }
 0x197   : > { %p1090_p8 = pneg %p1089_p7 }
 0x199   : > { %1181 = dma.done.wait (%p1090_p8), %s993_s28, 384  }
 0x19a   : > { %1183 = vsyncadd (%p1090_p8), %s993_s28, 4294966912  ;;  %p14_p9 = scmp.ge.s32.totalorder %s1259_s21, 4   ;;  %s1466_s15 = smov %s1190_s16 }
 0x19b   : > { %s1467_s16 = smov %s1194_s17  ;;  %s1468_s17 = smov %s1270_s24 }
 0x19c   : > { %s1469_s18 = smov %s1259_s21  ;;  %16 = sbr.rel (!%p14_p9) target bundleno = 3 (0x3), region = 88 }
 0x1a1   :  { %999 = vsyncpa [#allocation3], 1 }
 0x1a2   :  { %1001 = vsyncpa [#allocation3 + $0x1], 1 }

</bundles_post_ra>
